<compile_context>
chip_gen: v6e
topology: v6e:2x2x1
jax: 0.10.0
libtpu: 0.0.40
codegen_flags: <defaults>
</compile_context>

<pallas_src>
import functools

import jax
import jax.numpy as jnp
import numpy as np
from jax.experimental import pallas as pl
from jax.experimental.pallas import tpu as pltpu

PAD = 128  # lane-aligned physical width for all feature dims


def _round_up(x, m):
    return ((x + m - 1) // m) * m


def wernet_kernel(x_ref, w_ref, b_ref, o_ref):
    # x_ref: (TB, 128)   w_ref: (4, 128, 128)   b_ref: (4, 128)   o_ref: (TB, 128)
    x = x_ref[...]
    # input_layer
    h = jnp.dot(x, w_ref[0], preferred_element_type=jnp.float32) + b_ref[0]
    # hidden_layers: Sigmoid, Linear, Sigmoid, Linear, Sigmoid
    h = jax.nn.sigmoid(h)
    h = jnp.dot(h, w_ref[1], preferred_element_type=jnp.float32) + b_ref[1]
    h = jax.nn.sigmoid(h)
    h = jnp.dot(h, w_ref[2], preferred_element_type=jnp.float32) + b_ref[2]
    h = jax.nn.sigmoid(h)
    # output_layer (padded to 128 lanes; real logits live in lanes [0,4))
    o_ref[...] = (jnp.dot(h, w_ref[3], preferred_element_type=jnp.float32)
                  + b_ref[3]).astype(o_ref.dtype)


@functools.partial(jax.jit, static_argnames=("out_dim", "tile_b"))
def wernet_forward(x, w_slab, b_slab, *, out_dim=4, tile_b=1024):
    """x: (B, in_dim) f32.  w_slab: (4, 128, 128) f32.  b_slab: (4, 128) f32."""
    B, in_dim = x.shape

    # Batch tile: multiple of 8 sublanes; whole (padded) batch if small.
    TB = min(tile_b, _round_up(B, 8))
    Bp = _round_up(B, TB)

    # Zero-pad activations to a lane-dense (Bp, 128) slab once, outside the kernel.
    xp = jnp.zeros((Bp, PAD), jnp.float32).at[:B, :in_dim].set(x)

    out_padded = pl.pallas_call(
        wernet_kernel,
        out_shape=jax.ShapeDtypeStruct((Bp, PAD), jnp.float32),
        grid_spec=pltpu.PrefetchScalarGridSpec(
            num_scalar_prefetch=0,
            grid=(Bp // TB,),
            in_specs=[
                pl.BlockSpec((TB, PAD), lambda i: (i, 0)),          # x tile (pipelined)
                pl.BlockSpec((4, PAD, PAD), lambda i: (0, 0, 0)),   # weights, VMEM-resident
                pl.BlockSpec((4, PAD), lambda i: (0, 0)),           # biases, VMEM-resident
            ],
            out_specs=pl.BlockSpec((TB, PAD), lambda i: (i, 0)),    # lane-dense output
        ),
        compiler_params=pltpu.CompilerParams(
            dimension_semantics=("parallel",),  # megacore / v7x dual-TC sharding
        ),
    )(xp, w_slab, b_slab)

    return out_padded[:B, :out_dim]


def init_linear(key, fan_in, fan_out):
    """Mimics PyTorch nn.Linear default init. W is stored (fan_in, fan_out)
    (transposed vs. torch) so the hot path is plain x @ W + b."""
    kw, kb = jax.random.split(key)
    bound = 1.0 / np.sqrt(fan_in)
    w = jax.random.uniform(kw, (fan_in, fan_out), jnp.float32, -bound, bound)
    b = jax.random.uniform(kb, (fan_out,), jnp.float32, -bound, bound)
    return w, b


def make_params(key, input_dim=100, output_dim=4, hidden=95):
    k1, k2, k3, k4 = jax.random.split(key, 4)
    return (
        init_linear(k1, input_dim, hidden),   # input_layer
        init_linear(k2, hidden, hidden),      # hidden_layers[1]
        init_linear(k3, hidden, hidden),      # hidden_layers[3]
        init_linear(k4, hidden, output_dim),  # output_layer
    )


def pack_params(params):
    """Zero-pad every layer to 128x128 / 128 and stack into two contiguous slabs."""
    w_slab = np.zeros((4, PAD, PAD), np.float32)
    b_slab = np.zeros((4, PAD), np.float32)
    for l, (w, b) in enumerate(params):
        w = np.asarray(w)
        b = np.asarray(b)
        w_slab[l, : w.shape[0], : w.shape[1]] = w
        b_slab[l, : b.shape[0]] = b
    return jnp.asarray(w_slab), jnp.asarray(b_slab)


def wernet_reference(x, params):
    (w1, b1), (w2, b2), (w3, b3), (w4, b4) = params
    h = x @ w1 + b1
    h = jax.nn.sigmoid(h)
    h = h @ w2 + b2
    h = jax.nn.sigmoid(h)
    h = h @ w3 + b3
    h = jax.nn.sigmoid(h)
    return h @ w4 + b4


if __name__ == "__main__":
    key = jax.random.PRNGKey(0)
    kx, kp = jax.random.split(key)

    batch, input_dim, output_dim = 8, 100, 4
    x = jax.random.normal(kx, (batch, input_dim), jnp.float32)
    params = make_params(kp, input_dim, output_dim)
    w_slab, b_slab = pack_params(params)  # pre-pack once, reused every call

    out = wernet_forward(x, w_slab, b_slab, out_dim=output_dim)
    out = jax.block_until_ready(out)

    ref = wernet_reference(x, params)
    np.testing.assert_allclose(np.asarray(out), np.asarray(ref), rtol=1e-5, atol=1e-5)

    print("KERNEL_OK")
</pallas_src>

<mosaic_0001>
module attributes {stable_mosaic.version = 11 : i64} {
  func.func @wernet_kernel(%arg0: i32, %arg1: memref<8x128xf32, #tpu.memory_space<vmem>>, %arg2: memref<4x128x128xf32, #tpu.memory_space<vmem>>, %arg3: memref<4x128xf32, #tpu.memory_space<vmem>>, %arg4: memref<8x128xf32, #tpu.memory_space<vmem>>) attributes {dimension_semantics = [#tpu.dimension_semantics<parallel>], iteration_bounds = array<i64: 1>, scalar_prefetch = 0 : i64, scratch_operands = 0 : i64, tpu.core_type = #tpu.core_type<tc>, window_params = [{transform_indices = @transform_0, window_bounds = array<i64: 8, 128>}, {pipeline_mode = #tpu.pipeline_mode<synchronous>, transform_indices = @transform_1, window_bounds = array<i64: 4, 128, 128>}, {pipeline_mode = #tpu.pipeline_mode<synchronous>, transform_indices = @transform_2, window_bounds = array<i64: 4, 128>}, {transform_indices = @transform_3, window_bounds = array<i64: 8, 128>}]} {
    %c0 = arith.constant 0 : index
    %c0_0 = arith.constant 0 : index
    %0 = vector.load %arg1[%c0, %c0_0] : memref<8x128xf32, #tpu.memory_space<vmem>>, vector<8x128xf32>
    %c0_1 = arith.constant 0 : index
    %c0_2 = arith.constant 0 : index
    %c0_3 = arith.constant 0 : index
    %1 = vector.load %arg2[%c0_1, %c0_2, %c0_3] : memref<4x128x128xf32, #tpu.memory_space<vmem>>, vector<1x128x128xf32>
    %2 = vector.shape_cast %1 : vector<1x128x128xf32> to vector<128x128xf32>
    %cst = arith.constant dense<0.000000e+00> : vector<8x128xf32>
    %3 = tpu.matmul %0, %2, %cst {dimension_numbers = #tpu.dot_dimension_numbers<[1], [0], [0], [1], [0, 0, 1, 1], [], []>} : vector<8x128xf32>, vector<128x128xf32>, vector<8x128xf32> -> vector<8x128xf32>
    %c0_4 = arith.constant 0 : index
    %c0_5 = arith.constant 0 : index
    %4 = vector.load %arg3[%c0_4, %c0_5] : memref<4x128xf32, #tpu.memory_space<vmem>>, vector<1x128xf32>
    %5 = vector.shape_cast %4 : vector<1x128xf32> to vector<128xf32>
    %6 = vector.shape_cast %5 : vector<128xf32> to vector<1x128xf32>
    %7 = vector.broadcast %6 : vector<1x128xf32> to vector<8x128xf32>
    %8 = arith.addf %3, %7 : vector<8x128xf32>
    %9 = arith.negf %8 : vector<8x128xf32>
    %10 = math.exp %9 : vector<8x128xf32>
    %cst_6 = arith.constant 1.000000e+00 : f32
    %11 = vector.broadcast %cst_6 : f32 to vector<8x128xf32>
    %12 = arith.addf %11, %10 : vector<8x128xf32>
    %13 = arith.divf %11, %12 : vector<8x128xf32>
    %c1 = arith.constant 1 : index
    %c0_7 = arith.constant 0 : index
    %c0_8 = arith.constant 0 : index
    %14 = vector.load %arg2[%c1, %c0_7, %c0_8] : memref<4x128x128xf32, #tpu.memory_space<vmem>>, vector<1x128x128xf32>
    %15 = vector.shape_cast %14 : vector<1x128x128xf32> to vector<128x128xf32>
    %cst_9 = arith.constant dense<0.000000e+00> : vector<8x128xf32>
    %16 = tpu.matmul %13, %15, %cst_9 {dimension_numbers = #tpu.dot_dimension_numbers<[1], [0], [0], [1], [0, 0, 1, 1], [], []>} : vector<8x128xf32>, vector<128x128xf32>, vector<8x128xf32> -> vector<8x128xf32>
    %c1_10 = arith.constant 1 : index
    %c0_11 = arith.constant 0 : index
    %17 = vector.load %arg3[%c1_10, %c0_11] : memref<4x128xf32, #tpu.memory_space<vmem>>, vector<1x128xf32>
    %18 = vector.shape_cast %17 : vector<1x128xf32> to vector<128xf32>
    %19 = vector.shape_cast %18 : vector<128xf32> to vector<1x128xf32>
    %20 = vector.broadcast %19 : vector<1x128xf32> to vector<8x128xf32>
    %21 = arith.addf %16, %20 : vector<8x128xf32>
    %22 = arith.negf %21 : vector<8x128xf32>
    %23 = math.exp %22 : vector<8x128xf32>
    %cst_12 = arith.constant 1.000000e+00 : f32
    %24 = vector.broadcast %cst_12 : f32 to vector<8x128xf32>
    %25 = arith.addf %24, %23 : vector<8x128xf32>
    %26 = arith.divf %24, %25 : vector<8x128xf32>
    %c2 = arith.constant 2 : index
    %c0_13 = arith.constant 0 : index
    %c0_14 = arith.constant 0 : index
    %27 = vector.load %arg2[%c2, %c0_13, %c0_14] : memref<4x128x128xf32, #tpu.memory_space<vmem>>, vector<1x128x128xf32>
    %28 = vector.shape_cast %27 : vector<1x128x128xf32> to vector<128x128xf32>
    %cst_15 = arith.constant dense<0.000000e+00> : vector<8x128xf32>
    %29 = tpu.matmul %26, %28, %cst_15 {dimension_numbers = #tpu.dot_dimension_numbers<[1], [0], [0], [1], [0, 0, 1, 1], [], []>} : vector<8x128xf32>, vector<128x128xf32>, vector<8x128xf32> -> vector<8x128xf32>
    %c2_16 = arith.constant 2 : index
    %c0_17 = arith.constant 0 : index
    %30 = vector.load %arg3[%c2_16, %c0_17] : memref<4x128xf32, #tpu.memory_space<vmem>>, vector<1x128xf32>
    %31 = vector.shape_cast %30 : vector<1x128xf32> to vector<128xf32>
    %32 = vector.shape_cast %31 : vector<128xf32> to vector<1x128xf32>
    %33 = vector.broadcast %32 : vector<1x128xf32> to vector<8x128xf32>
    %34 = arith.addf %29, %33 : vector<8x128xf32>
    %35 = arith.negf %34 : vector<8x128xf32>
    %36 = math.exp %35 : vector<8x128xf32>
    %cst_18 = arith.constant 1.000000e+00 : f32
    %37 = vector.broadcast %cst_18 : f32 to vector<8x128xf32>
    %38 = arith.addf %37, %36 : vector<8x128xf32>
    %39 = arith.divf %37, %38 : vector<8x128xf32>
    %c3 = arith.constant 3 : index
    %c0_19 = arith.constant 0 : index
    %c0_20 = arith.constant 0 : index
    %40 = vector.load %arg2[%c3, %c0_19, %c0_20] : memref<4x128x128xf32, #tpu.memory_space<vmem>>, vector<1x128x128xf32>
    %41 = vector.shape_cast %40 : vector<1x128x128xf32> to vector<128x128xf32>
    %cst_21 = arith.constant dense<0.000000e+00> : vector<8x128xf32>
    %42 = tpu.matmul %39, %41, %cst_21 {dimension_numbers = #tpu.dot_dimension_numbers<[1], [0], [0], [1], [0, 0, 1, 1], [], []>} : vector<8x128xf32>, vector<128x128xf32>, vector<8x128xf32> -> vector<8x128xf32>
    %c3_22 = arith.constant 3 : index
    %c0_23 = arith.constant 0 : index
    %43 = vector.load %arg3[%c3_22, %c0_23] : memref<4x128xf32, #tpu.memory_space<vmem>>, vector<1x128xf32>
    %44 = vector.shape_cast %43 : vector<1x128xf32> to vector<128xf32>
    %45 = vector.shape_cast %44 : vector<128xf32> to vector<1x128xf32>
    %46 = vector.broadcast %45 : vector<1x128xf32> to vector<8x128xf32>
    %47 = arith.addf %42, %46 : vector<8x128xf32>
    %c0_24 = arith.constant 0 : index
    %c0_25 = arith.constant 0 : index
    %48 = vector.load %arg4[%c0_24, %c0_25] : memref<8x128xf32, #tpu.memory_space<vmem>>, vector<8x128xf32>
    tpu.vector_store %arg4[%c0_24, %c0_25], %47 {strides = array<i32>} : memref<8x128xf32, #tpu.memory_space<vmem>>, vector<8x128xf32>,
    return
  }
  func.func @transform_0(%arg0: i32) -> (i32, i32) {
    %c0_i32 = arith.constant 0 : i32
    %c0_i32_0 = arith.constant 0 : i32
    return %arg0, %c0_i32 : i32, i32
  }
  func.func @transform_1(%arg0: i32) -> (i32, i32, i32) {
    %c0_i32 = arith.constant 0 : i32
    %c0_i32_0 = arith.constant 0 : i32
    %c0_i32_1 = arith.constant 0 : i32
    %c0_i32_2 = arith.constant 0 : i32
    return %c0_i32, %c0_i32_0, %c0_i32_1 : i32, i32, i32
  }
  func.func @transform_2(%arg0: i32) -> (i32, i32) {
    %c0_i32 = arith.constant 0 : i32
    %c0_i32_0 = arith.constant 0 : i32
    %c0_i32_1 = arith.constant 0 : i32
    return %c0_i32, %c0_i32_0 : i32, i32
  }
  func.func @transform_3(%arg0: i32) -> (i32, i32) {
    %c0_i32 = arith.constant 0 : i32
    %c0_i32_0 = arith.constant 0 : i32
    return %arg0, %c0_i32 : i32, i32
  }
}

</mosaic_0001>

<bundles_post_ra>
// kernel: wernet_forward.1
= control target key start
LH: loop header
LB: loop body
LE: loop exit
PB: predicated region body
PF: predicated region fallthrough
CT: control target
= control target key end

     0   :  { %8 = vsyncpa [#allocation3], 0  ;;  %s674_s12 = smov [#allocation2]   ;;  %s792_s0 = inlined_call_operand.vmem [shape: f32[8,128], index: 0, kind: input, shape index: {}]   ;;  %s793_s1 = inlined_call_operand.hbm [shape: f32[4,128,128], index: 1, kind: input, shape index: {}]   ;;  %s794_s2 = inlined_call_operand.vmem [shape: f32[4,128], index: 2, kind: input, shape index: {}]   ;;  %s795_s3 = inlined_call_operand.vmem [shape: f32[8,128], index: 3, kind: output, shape index: {}]  }
   0x1   :  { %s16_s13 = sshll.u32 %s674_s12, 4  ;;  %s17_s13 = int_to_ptr.vmem [resolvable:$true] %s16_s13 }
   0x2   :  { %s660_s14 = scalar_lea.vmem %s17_s13, 8192  ;;  %p665_p1 = scmp.lt.s32.totalorder %s17_s13, %s17_s13 }
   0x3   :  { %p661_p0 = scmp.ne.s32.totalorder %s17_s13, %s660_s14  ;;  %p666_p2 = scmp.lt.s32.totalorder %s660_s14, %s660_s14 }
   0x5   :  { %p667_p3 = por %p666_p2, %p665_p1 }
   0x7   :  { %p668_p4 = pnand %p667_p3, %p661_p0 }
   0x9   :  { %671 = shalt.err (!%p668_p4)
}
   0xa   :  { %s675_s15 = smov 128   ;;  %s676_s16 = smov 8  }
   0xb   :  { %22 = dma.hbm_to_vmem [thread:$0]  %s793_s1, 8192, %s17_s13, [#allocation3], %s675_s15, %s675_s15, %s676_s16  }
   0xc   :  { %672 = dma.done.wait [#allocation3], 8192  }
   0xd   :  { %673 = vsyncadd [#allocation3], 4294959104  ;;  %v677_v0 = vmov 0.0   ;;  %vm678_vm0 = vmmov 0   ;;  %v44_v1 = vld [vmem:[#allocation2 + $0x78] sm:$0xff]  ;;  %v43_v2 = vld [vmem:[#allocation2 + $0x70] sm:$0xff] }
   0xe   :  { %495 = vmatprep.subr.mxu0 %v677_v0  ;;  %527 = vmatprep.mubr.msk.f32.mxu0 %vm678_vm0, %v677_v0  ;;  %v42_v3 = vld [vmem:[#allocation2 + $0x68] sm:$0xff]  ;;  %v41_v4 = vld [vmem:[#allocation2 + $0x60] sm:$0xff]  ;;  %v40_v5 = vld [vmem:[#allocation2 + $0x58] sm:$0xff] }
   0xf   :  { %530 = vmatprep.subr.mxu1 %v677_v0  ;;  %562 = vmatprep.mubr.msk.f32.mxu1 %vm678_vm0, %v677_v0  ;;  %v39_v6 = vld [vmem:[#allocation2 + $0x50] sm:$0xff]  ;;  %v38_v7 = vld [vmem:[#allocation2 + $0x48] sm:$0xff]  ;;  %v37_v8 = vld [vmem:[#allocation2 + $0x40] sm:$0xff] }
  0x10   :  { %496 = vmatpush3.msra.mxu0 %v44_v1  ;;  %v36_v9 = vld [vmem:[#allocation2 + $0x38] sm:$0xff]  ;;  %v35_v10 = vld [vmem:[#allocation2 + $0x30] sm:$0xff]  ;;  %v34_v11 = vld [vmem:[#allocation2 + $0x28] sm:$0xff] }
  0x11   :  { %497 = vmatprep.subr.mxu0 %v677_v0  ;;  %v33_v12 = vld [vmem:[#allocation2 + $0x20] sm:$0xff]  ;;  %v32_v13 = vld [vmem:[#allocation2 + $0x18] sm:$0xff]  ;;  %v31_v14 = vld [vmem:[#allocation2 + $0x10] sm:$0xff] }
  0x12   :  { %498 = vmatpush3.msra.mxu0 %v43_v2  ;;  %v30_v15 = vld [vmem:[#allocation2 + $0x8] sm:$0xff]  ;;  %v29_v16 = vld [vmem:[#allocation2] sm:$0xff]  ;;  %v142_v18 = vld [vmem:[#allocation2 + $0xf8] sm:$0xff] }
  0x13   :  { %499 = vmatprep.subr.mxu0 %v677_v0  ;;  %v28_v17 = vld [vmem:[%s792_s0] sm:$0xff]  ;;  %531 = vmatpush3.msra.mxu1 %v142_v18  ;;  %v141_v19 = vld [vmem:[#allocation2 + $0xf0] sm:$0xff]  ;;  %v140_v20 = vld [vmem:[#allocation2 + $0xe8] sm:$0xff] }
  0x14   :  { %500 = vmatpush3.msra.mxu0 %v42_v3  ;;  %532 = vmatprep.subr.mxu1 %v677_v0  ;;  %v139_v21 = vld [vmem:[#allocation2 + $0xe0] sm:$0xff]  ;;  %v138_v22 = vld [vmem:[#allocation2 + $0xd8] sm:$0xff]  ;;  %v137_v23 = vld [vmem:[#allocation2 + $0xd0] sm:$0xff] }
  0x15   :  { %501 = vmatprep.subr.mxu0 %v677_v0  ;;  %533 = vmatpush3.msra.mxu1 %v141_v19  ;;  %v136_v24 = vld [vmem:[#allocation2 + $0xc8] sm:$0xff]  ;;  %v135_v25 = vld [vmem:[#allocation2 + $0xc0] sm:$0xff]  ;;  %v134_v26 = vld [vmem:[#allocation2 + $0xb8] sm:$0xff] }
  0x16   :  { %502 = vmatpush3.msra.mxu0 %v41_v4  ;;  %534 = vmatprep.subr.mxu1 %v677_v0  ;;  %v133_v27 = vld [vmem:[#allocation2 + $0xb0] sm:$0xff]  ;;  %v132_v28 = vld [vmem:[#allocation2 + $0xa8] sm:$0xff]  ;;  %v131_v29 = vld [vmem:[#allocation2 + $0xa0] sm:$0xff] }
  0x17   :  { %503 = vmatprep.subr.mxu0 %v677_v0  ;;  %535 = vmatpush3.msra.mxu1 %v140_v20  ;;  %v130_v30 = vld [vmem:[#allocation2 + $0x98] sm:$0xff]  ;;  %v129_v31 = vld [vmem:[#allocation2 + $0x90] sm:$0xff]  ;;  %v128_v32 = vld [vmem:[#allocation2 + $0x88] sm:$0xff] }
  0x18   :  { %504 = vmatpush3.msra.mxu0 %v40_v5  ;;  %536 = vmatprep.subr.mxu1 %v677_v0  ;;  %v127_v33 = vld [vmem:[#allocation2 + $0x80] sm:$0xff]  ;;  %v240_v42 = vld [vmem:[#allocation2 + $0x178] sm:$0xff]  ;;  %v239_v43 = vld [vmem:[#allocation2 + $0x170] sm:$0xff] }
  0x19   :  { %505 = vmatprep.subr.mxu0 %v677_v0  ;;  %537 = vmatpush3.msra.mxu1 %v139_v21  ;;  %v420_v34 = vld [vmem:[%s794_s2] ss:$0 sm:$0xff]  ;;  %v238_v44 = vld [vmem:[#allocation2 + $0x168] sm:$0xff]  ;;  %v236_v46 = vld [vmem:[#allocation2 + $0x158] sm:$0xff] }
  0x1a   :  { %506 = vmatpush3.msra.mxu0 %v39_v6  ;;  %538 = vmatprep.subr.mxu1 %v677_v0  ;;  %v237_v45 = vld [vmem:[#allocation2 + $0x160] sm:$0xff]  ;;  %v235_v47 = vld [vmem:[#allocation2 + $0x150] sm:$0xff]  ;;  %v234_v48 = vld [vmem:[#allocation2 + $0x148] sm:$0xff] }
  0x1b   :  { %507 = vmatprep.subr.mxu0 %v677_v0  ;;  %539 = vmatpush3.msra.mxu1 %v138_v22  ;;  %v233_v49 = vld [vmem:[#allocation2 + $0x140] sm:$0xff]  ;;  %v232_v50 = vld [vmem:[#allocation2 + $0x138] sm:$0xff]  ;;  %v231_v51 = vld [vmem:[#allocation2 + $0x130] sm:$0xff] }
  0x1c   :  { %508 = vmatpush3.msra.mxu0 %v38_v7  ;;  %540 = vmatprep.subr.mxu1 %v677_v0  ;;  %v230_v52 = vld [vmem:[#allocation2 + $0x128] sm:$0xff]  ;;  %v229_v53 = vld [vmem:[#allocation2 + $0x120] sm:$0xff]  ;;  %v228_v54 = vld [vmem:[#allocation2 + $0x118] sm:$0xff] }
  0x1d   :  { %509 = vmatprep.subr.mxu0 %v677_v0  ;;  %541 = vmatpush3.msra.mxu1 %v137_v23  ;;  %v227_v55 = vld [vmem:[#allocation2 + $0x110] sm:$0xff]  ;;  %v226_v56 = vld [vmem:[#allocation2 + $0x108] sm:$0xff]  ;;  %v225_v57 = vld [vmem:[#allocation2 + $0x100] sm:$0xff] }
  0x1e   :  { %510 = vmatpush3.msra.mxu0 %v37_v8  ;;  %542 = vmatprep.subr.mxu1 %v677_v0  ;;  %v422_v58 = vld [vmem:[%s794_s2 + $0x1] ss:$0 sm:$0xff]  ;;  %v338_v3 = vld [vmem:[#allocation2 + $0x1f8] sm:$0xff]  ;;  %v337_v4 = vld [vmem:[#allocation2 + $0x1f0] sm:$0xff] }
  0x1f   :  { %511 = vmatprep.subr.mxu0 %v677_v0  ;;  %543 = vmatpush3.msra.mxu1 %v136_v24  ;;  %v336_v5 = vld [vmem:[#allocation2 + $0x1e8] sm:$0xff]  ;;  %v335_v6 = vld [vmem:[#allocation2 + $0x1e0] sm:$0xff]  ;;  %v334_v7 = vld [vmem:[#allocation2 + $0x1d8] sm:$0xff] }
  0x20   :  { %512 = vmatpush3.msra.mxu0 %v36_v9  ;;  %544 = vmatprep.subr.mxu1 %v677_v0  ;;  %v333_v8 = vld [vmem:[#allocation2 + $0x1d0] sm:$0xff]  ;;  %v332_v9 = vld [vmem:[#allocation2 + $0x1c8] sm:$0xff]  ;;  %v323_v18 = vld [vmem:[#allocation2 + $0x180] sm:$0xff] }
  0x21   :  { %513 = vmatprep.subr.mxu0 %v677_v0  ;;  %545 = vmatpush3.msra.mxu1 %v135_v25  ;;  %v424_v19 = vld [vmem:[%s794_s2 + $0x2] ss:$0 sm:$0xff] }
  0x22   :  { %514 = vmatpush3.msra.mxu0 %v35_v10  ;;  %546 = vmatprep.subr.mxu1 %v677_v0  ;;  %v331_v10 = vld [vmem:[#allocation2 + $0x1c0] sm:$0xff] }
  0x23   :  { %515 = vmatprep.subr.mxu0 %v677_v0  ;;  %547 = vmatpush3.msra.mxu1 %v134_v26 }
  0x24   :  { %516 = vmatpush3.msra.mxu0 %v34_v11  ;;  %548 = vmatprep.subr.mxu1 %v677_v0  ;;  %v330_v11 = vld [vmem:[#allocation2 + $0x1b8] sm:$0xff] }
  0x25   :  { %517 = vmatprep.subr.mxu0 %v677_v0  ;;  %549 = vmatpush3.msra.mxu1 %v133_v27  ;;  %v426_v27 = vld [vmem:[%s794_s2 + $0x3] ss:$0 sm:$0xff] }
  0x26   :  { %518 = vmatpush3.msra.mxu0 %v33_v12  ;;  %550 = vmatprep.subr.mxu1 %v677_v0  ;;  %v329_v12 = vld [vmem:[#allocation2 + $0x1b0] sm:$0xff] }
  0x27   :  { %519 = vmatprep.subr.mxu0 %v677_v0  ;;  %551 = vmatpush3.msra.mxu1 %v132_v28 }
  0x28   :  { %520 = vmatpush3.msra.mxu0 %v32_v13  ;;  %552 = vmatprep.subr.mxu1 %v677_v0  ;;  %v328_v13 = vld [vmem:[#allocation2 + $0x1a8] sm:$0xff] }
  0x29   :  { %521 = vmatprep.subr.mxu0 %v677_v0  ;;  %553 = vmatpush3.msra.mxu1 %v131_v29 }
  0x2a   :  { %522 = vmatpush3.msra.mxu0 %v31_v14  ;;  %554 = vmatprep.subr.mxu1 %v677_v0  ;;  %v327_v14 = vld [vmem:[#allocation2 + $0x1a0] sm:$0xff] }
  0x2b   :  { %523 = vmatprep.subr.mxu0 %v677_v0  ;;  %555 = vmatpush3.msra.mxu1 %v130_v30 }
  0x2c   :  { %524 = vmatpush3.msra.mxu0 %v30_v15  ;;  %556 = vmatprep.subr.mxu1 %v677_v0  ;;  %v326_v15 = vld [vmem:[#allocation2 + $0x198] sm:$0xff] }
  0x2d   :  { %525 = vmatprep.subr.mxu0 %v677_v0  ;;  %557 = vmatpush3.msra.mxu1 %v129_v31 }
  0x2e   :  { %526 = vmatpush3.msra.mxu0 %v29_v16  ;;  %558 = vmatprep.subr.mxu1 %v677_v0  ;;  %v325_v16 = vld [vmem:[#allocation2 + $0x190] sm:$0xff] }
  0x2f   :  { %528 = vmatmul.mubr.f32.vlgmr.msra.gmra.mxu0 %v28_v17  ;;  %565 = vmatprep.subr.mxu0 %v677_v0  ;;  %v324_v17 = vld [vmem:[#allocation2 + $0x188] sm:$0xff] }
  0x30   :  { %597 = vmatprep.mubr.msk.f32.mxu0 %vm678_vm0, %v677_v0  ;;  %559 = vmatpush3.msra.mxu1 %v128_v32 }
  0x31   :  { %560 = vmatprep.subr.mxu1 %v677_v0  ;;  %566 = vmatpush3.msra.mxu0 %v240_v42 }
  0x32   :  { %561 = vmatpush3.msra.mxu1 %v127_v33  ;;  %567 = vmatprep.subr.mxu0 %v677_v0 }
  0x33   :  { %600 = vmatprep.subr.mxu1 %v677_v0  ;;  %568 = vmatpush3.msra.mxu0 %v239_v43 }
  0x34   :  { %569 = vmatprep.subr.mxu0 %v677_v0 }
  0x35   :  { %570 = vmatpush3.msra.mxu0 %v238_v44 }
  0x36   :  { %571 = vmatprep.subr.mxu0 %v677_v0 }
  0x37   :  { %572 = vmatpush3.msra.mxu0 %v237_v45 }
  0x38   :  { %573 = vmatprep.subr.mxu0 %v677_v0 }
  0x39   :  { %574 = vmatpush3.msra.mxu0 %v236_v46 }
  0x3a   :  { %575 = vmatprep.subr.mxu0 %v677_v0 }
  0x3b   :  { %576 = vmatpush3.msra.mxu0 %v235_v47 }
  0x3c   :  { %577 = vmatprep.subr.mxu0 %v677_v0 }
  0x3d   :  { %578 = vmatpush3.msra.mxu0 %v234_v48 }
  0x3e   :  { %579 = vmatprep.subr.mxu0 %v677_v0 }
  0x3f   :  { %580 = vmatpush3.msra.mxu0 %v233_v49 }
  0x40   :  { %581 = vmatprep.subr.mxu0 %v677_v0 }
  0x41   :  { %582 = vmatpush3.msra.mxu0 %v232_v50 }
  0x42   :  { %583 = vmatprep.subr.mxu0 %v677_v0 }
  0x43   :  { %584 = vmatpush3.msra.mxu0 %v231_v51 }
  0x44   :  { %585 = vmatprep.subr.mxu0 %v677_v0 }
  0x45   :  { %586 = vmatpush3.msra.mxu0 %v230_v52 }
  0x46   :  { %587 = vmatprep.subr.mxu0 %v677_v0 }
  0x47   :  { %588 = vmatpush3.msra.mxu0 %v229_v53 }
  0x48   :  { %589 = vmatprep.subr.mxu0 %v677_v0 }
  0x49   :  { %590 = vmatpush3.msra.mxu0 %v228_v54 }
  0x4a   :  { %591 = vmatprep.subr.mxu0 %v677_v0 }
  0x4b   :  { %592 = vmatpush3.msra.mxu0 %v227_v55 }
  0x4c   :  { %593 = vmatprep.subr.mxu0 %v677_v0 }
  0x4d   :  { %594 = vmatpush3.msra.mxu0 %v226_v56 }
  0x4e   :  { %595 = vmatprep.subr.mxu0 %v677_v0 }
  0x4f   :  { %596 = vmatpush3.msra.mxu0 %v225_v57 }
  0xef   :  { %v116_v35 = vpop.f32.mrf.mxu0 }
  0xf0   :  { %v117_v36 = vadd.f32 %v420_v34, %v116_v35 }
  0xf1   :  { %v529_v37 = vpop.f32.mrf.mxu0 }
  0xf2   :  { %v421_v38 = vmul.f32 -1.442695, %v117_v36 }
  0xf4   :  { %640 = vpow2.f32 %v421_v38 }
 0x101   :  { %v641_v39 = vpop.eup %640 }
 0x102   :  { %v123_v40 = vadd.f32 1.0, %v641_v39 }
 0x104   :  { %642 = vrcp.f32 %v123_v40 }
 0x111   :  { %v643_v41 = vpop.eup %642 }
 0x112   :  { %563 = vmatmul.mubr.f32.vlgmr.msra.gmra.mxu1 %v643_v41 }
 0x113   :  { %632 = vmatprep.mubr.msk.f32.mxu1 %vm678_vm0, %v677_v0  ;;  %601 = vmatpush3.msra.mxu1 %v338_v3 }
 0x114   :  { %602 = vmatprep.subr.mxu1 %v677_v0 }
 0x115   :  { %603 = vmatpush3.msra.mxu1 %v337_v4 }
 0x116   :  { %604 = vmatprep.subr.mxu1 %v677_v0 }
 0x117   :  { %605 = vmatpush3.msra.mxu1 %v336_v5 }
 0x118   :  { %606 = vmatprep.subr.mxu1 %v677_v0 }
 0x119   :  { %607 = vmatpush3.msra.mxu1 %v335_v6 }
 0x11a   :  { %608 = vmatprep.subr.mxu1 %v677_v0 }
 0x11b   :  { %609 = vmatpush3.msra.mxu1 %v334_v7 }
 0x11c   :  { %610 = vmatprep.subr.mxu1 %v677_v0 }
 0x11d   :  { %611 = vmatpush3.msra.mxu1 %v333_v8 }
 0x11e   :  { %612 = vmatprep.subr.mxu1 %v677_v0 }
 0x11f   :  { %613 = vmatpush3.msra.mxu1 %v332_v9 }
 0x120   :  { %614 = vmatprep.subr.mxu1 %v677_v0 }
 0x121   :  { %615 = vmatpush3.msra.mxu1 %v331_v10 }
 0x122   :  { %616 = vmatprep.subr.mxu1 %v677_v0 }
 0x123   :  { %617 = vmatpush3.msra.mxu1 %v330_v11 }
 0x124   :  { %618 = vmatprep.subr.mxu1 %v677_v0 }
 0x125   :  { %619 = vmatpush3.msra.mxu1 %v329_v12 }
 0x126   :  { %620 = vmatprep.subr.mxu1 %v677_v0 }
 0x127   :  { %621 = vmatpush3.msra.mxu1 %v328_v13 }
 0x128   :  { %622 = vmatprep.subr.mxu1 %v677_v0 }
 0x129   :  { %623 = vmatpush3.msra.mxu1 %v327_v14 }
 0x12a   :  { %624 = vmatprep.subr.mxu1 %v677_v0 }
 0x12b   :  { %625 = vmatpush3.msra.mxu1 %v326_v15 }
 0x12c   :  { %626 = vmatprep.subr.mxu1 %v677_v0 }
 0x12d   :  { %627 = vmatpush3.msra.mxu1 %v325_v16 }
 0x12e   :  { %628 = vmatprep.subr.mxu1 %v677_v0 }
 0x12f   :  { %629 = vmatpush3.msra.mxu1 %v324_v17 }
 0x130   :  { %630 = vmatprep.subr.mxu1 %v677_v0 }
 0x131   :  { %631 = vmatpush3.msra.mxu1 %v323_v18 }
 0x1d2   :  { %v214_v59 = vpop.f32.mrf.mxu1 }
 0x1d3   :  { %v215_v60 = vadd.f32 %v422_v58, %v214_v59 }
 0x1d4   :  { %v564_v61 = vpop.f32.mrf.mxu1 }
 0x1d5   :  { %v423_v62 = vmul.f32 -1.442695, %v215_v60 }
 0x1d7   :  { %644 = vpow2.f32 %v423_v62 }
 0x1e4   :  { %v645_v63 = vpop.eup %644 }
 0x1e5   :  { %v221_v1 = vadd.f32 1.0, %v645_v63 }
 0x1e7   :  { %646 = vrcp.f32 %v221_v1 }
 0x1f4   :  { %v647_v2 = vpop.eup %646 }
 0x1f5   :  { %598 = vmatmul.mubr.f32.vlgmr.msra.gmra.mxu0 %v647_v2 }
 0x2b5   :  { %v312_v20 = vpop.f32.mrf.mxu0 }
 0x2b6   :  { %v313_v21 = vadd.f32 %v424_v19, %v312_v20 }
 0x2b7   :  { %v599_v22 = vpop.f32.mrf.mxu0 }
 0x2b8   :  { %v425_v23 = vmul.f32 -1.442695, %v313_v21 }
 0x2ba   :  { %648 = vpow2.f32 %v425_v23 }
 0x2c7   :  { %v649_v24 = vpop.eup %648 }
 0x2c8   :  { %v319_v25 = vadd.f32 1.0, %v649_v24 }
 0x2ca   :  { %650 = vrcp.f32 %v319_v25 }
 0x2d7   :  { %v651_v26 = vpop.eup %650 }
 0x2d8   :  { %633 = vmatmul.mubr.f32.vlgmr.msra.gmra.mxu1 %v651_v26 }
 0x398   :  { %v410_v0 = vpop.f32.mrf.mxu1 }
 0x399   :  { %v411_v28 = vadd.f32 %v426_v27, %v410_v0 }
 0x39a   :  { %v634_v29 = vpop.f32.mrf.mxu1 }
 0x39b   :  { %414 = vst [vmem:[%s795_s3] sm:$0xff] %v411_v28 }
 0x39c   :  { %419 = vsyncpa [#allocation3], 1 }

</bundles_post_ra>
